<compile_context>
chip_gen: v6e
topology: v6e:2x2x1
jax: 0.10.0
libtpu: 0.0.40
codegen_flags: <defaults>
</compile_context>

<pallas_src>
import functools
import math

import jax
import jax.numpy as jnp
from jax import lax
from jax.experimental import pallas as pl
from jax.experimental.pallas import tpu as pltpu


# Sentinel used for padded label slots; never matches a real label.
_SENTINEL = jnp.iinfo(jnp.int32).min


def _round_up(x, m):
    return (x + m - 1) // m * m


def _cl_tiled_kernel(*refs, use_labels2, tk, acc_w, pad_cols):
    """Grid = (row_blocks, col_blocks); the col axis is the reduction axis.

    refs layout:
      xq_ref  : (TQ, Dp) bf16  normalized rows, pre-scaled by 1/sqrt(T)
      xk_ref  : (TK, Dp) bf16  same matrix, column block (contracted on D)
      l1c_ref : (TQ, 1)  i32   row labels      l1r_ref : (1, TK) i32 col labels
      [l2c_ref, l2r_ref]       second label pair (only if use_labels2)
      cnt_ref : (TQ, 1)  f32   precomputed mask.sum(-1) per row
      out_ref : (TQ, 1)  f32   per-row loss term (written on last col step)
      pos_acc, neg_acc : (TQ, acc_w) f32 VMEM lane-width partial accumulators
    """
    if use_labels2:
        (xq_ref, xk_ref, l1c_ref, l1r_ref, l2c_ref, l2r_ref, cnt_ref,
         out_ref, pos_acc, neg_acc) = refs
    else:
        (xq_ref, xk_ref, l1c_ref, l1r_ref, cnt_ref,
         out_ref, pos_acc, neg_acc) = refs
        l2c_ref = l2r_ref = None

    j = pl.program_id(1)

    @pl.when(j == 0)
    def _init():
        pos_acc[...] = jnp.zeros_like(pos_acc)
        neg_acc[...] = jnp.zeros_like(neg_acc)

    # MXU: (TQ,D)x(TK,D) 'qd,kd->qk' contraction; bf16 operands, f32 accumulate.
    # Temperature is folded into the operands, so this already is sim/T.
    s = lax.dot_general(xq_ref[...], xk_ref[...],
                        dimension_numbers=(((1,), (1,)), ((), ())),
                        preferred_element_type=jnp.float32)          # (TQ, TK)
    e = jnp.exp(s)                                                   # EUP, f32

    # Boolean positive-pair mask. Padded columns carry a sentinel label, so
    # they always land on the negative side and contribute exp(0)=1 each.
    m = l1c_ref[...] == l1r_ref[...]                                 # (TQ, TK)
    if use_labels2:
        m = m & (l2c_ref[...] == l2r_ref[...])

    zero = jnp.float32(0.0)
    pos_t = jnp.where(m, s, zero)
    neg_t = jnp.where(m, zero, e)

    # Lane-width partial accumulation: static lane-aligned 128-wide slices
    # summed with VPU adds; the single cross-lane reduce happens in finalize.
    def lane_fold(x):
        if tk <= acc_w:
            return x
        out = x[:, 0:acc_w]
        for c in range(1, tk // acc_w):
            out = out + x[:, c * acc_w:(c + 1) * acc_w]
        return out

    pos_acc[...] += lane_fold(pos_t)
    neg_acc[...] += lane_fold(neg_t)

    @pl.when(j == pl.num_programs(1) - 1)
    def _finalize():
        pos = jnp.sum(pos_acc[...], axis=-1, keepdims=True)
        neg = jnp.sum(neg_acc[...], axis=-1, keepdims=True)
        if pad_cols:
            neg = neg - jnp.float32(pad_cols)   # each padded col added exp(0)=1
        out_ref[...] = (-pos + jnp.log(neg)) / cnt_ref[...]


@functools.partial(jax.jit, static_argnames=("temperature",))
def cl_forward(x1, x2, labels1, labels2=None, *, temperature=0.5):
    """Pallas implementation of CL.forward (returns a scalar loss)."""
    assert x1.shape == x2.shape and x1.ndim == 2
    b, d = x1.shape
    two_b = 2 * b

    lab1 = labels1.reshape(-1).astype(jnp.int32)
    if lab1.shape[0] != b:
        raise ValueError("Num of labels does not match num of features")
    use_labels2 = labels2 is not None
    lab2 = None if labels2 is None else labels2.reshape(-1).astype(jnp.int32)

    # --- normalize + fold 1/sqrt(T) into rows, cast MXU operands to bf16 ---
    x = jnp.concatenate([x1, x2], axis=0).astype(jnp.float32)
    sumsq = jnp.sum(x * x, axis=-1, keepdims=True)
    inv_norm = lax.rsqrt(jnp.maximum(sumsq, jnp.float32(1e-24)))  # 1/max(||x||,1e-12)
    scale = jnp.float32(1.0 / math.sqrt(float(temperature)))
    xn = (x * (inv_norm * scale)).astype(jnp.bfloat16)            # rows give sim/T

    # --- tile / padding selection ---
    dp = _round_up(max(d, 1), 128)                 # lane-dense contraction dim
    if two_b <= 128:
        tq = tk = p2b = _round_up(two_b, 8)        # single tile (tiny case)
    elif two_b <= 512:
        tq = tk = p2b = _round_up(two_b, 128)      # single tile, lane-folded acc
    else:
        # TQ large so the column operand is re-streamed from HBM only p2b/tq
        # times; TK moderate; p2b >= 2*tq so v7x gets >= 2 row blocks.
        tq, tk = (512, 256) if dp <= 4096 else (256, 256)
        p2b = _round_up(two_b, tq)
    acc_w = min(tk, 128)
    pad_cols = p2b - two_b

    xn = jnp.pad(xn, ((0, pad_cols), (0, dp - d)))                # (P2B, Dp) bf16

    # Labels padded with a sentinel that never matches a real label: padded
    # columns need no per-tile masking (their exp(0)=1 is subtracted once).
    lab1_2b = jnp.pad(jnp.concatenate([lab1, lab1]), (0, pad_cols),
                      constant_values=_SENTINEL)

    # mask.sum(-1) precomputed here (tiny O(B^2) int compare) -> removes one
    # in-kernel accumulator. Padded rows get 1.0 (sliced off before the mean).
    m_b = lab1[:, None] == lab1[None, :]
    if use_labels2:
        m_b = m_b & (lab2[:, None] == lab2[None, :])
    cnt_b = 2.0 * jnp.sum(m_b.astype(jnp.float32), axis=1)
    cnt_2b = jnp.pad(jnp.concatenate([cnt_b, cnt_b]), (0, pad_cols),
                     constant_values=1.0)

    row_spec = pl.BlockSpec((tq, dp), lambda i, j: (i, 0))
    col_spec = pl.BlockSpec((tk, dp), lambda i, j: (j, 0))
    lcol_spec = pl.BlockSpec((tq, 1), lambda i, j: (i, 0))
    lrow_spec = pl.BlockSpec((1, tk), lambda i, j: (0, j))

    inputs = [xn, xn, lab1_2b.reshape(p2b, 1), lab1_2b.reshape(1, p2b)]
    in_specs = [row_spec, col_spec, lcol_spec, lrow_spec]
    if use_labels2:
        lab2_2b = jnp.pad(jnp.concatenate([lab2, lab2]), (0, pad_cols),
                          constant_values=_SENTINEL)
        inputs += [lab2_2b.reshape(p2b, 1), lab2_2b.reshape(1, p2b)]
        in_specs += [lcol_spec, lrow_spec]
    inputs += [cnt_2b.reshape(p2b, 1)]
    in_specs += [lcol_spec]

    kernel = functools.partial(
        _cl_tiled_kernel, use_labels2=use_labels2, tk=tk, acc_w=acc_w,
        pad_cols=pad_cols)

    row_blocks = p2b // tq
    cost = pl.CostEstimate(
        flops=2 * p2b * p2b * dp,
        transcendentals=p2b * p2b,
        bytes_accessed=(1 + row_blocks) * p2b * dp * 2 + 4 * p2b * 4,
    )

    per_row = pl.pallas_call(
        kernel,
        out_shape=jax.ShapeDtypeStruct((p2b, 1), jnp.float32),
        grid_spec=pltpu.PrefetchScalarGridSpec(
            num_scalar_prefetch=0,
            grid=(row_blocks, p2b // tk),
            in_specs=in_specs,
            out_specs=pl.BlockSpec((tq, 1), lambda i, j: (i, 0)),
            scratch_shapes=[pltpu.VMEM((tq, acc_w), jnp.float32)] * 2,
        ),
        compiler_params=pltpu.CompilerParams(
            dimension_semantics=("parallel", "arbitrary"),
            # v5e default scoped VMEM is only 16 MiB; raise it explicitly but
            # stay well under v7x's 64 MiB physical per-core VMEM.
            vmem_limit_bytes=48 * 1024 * 1024,
        ),
        cost_estimate=cost,
    )(*inputs)

    # final mean over the 2B real rows (padded rows sliced off)
    return jnp.sum(per_row[:two_b, 0]) / jnp.float32(two_b)


def cl_forward_ref(x1, x2, labels1, labels2=None, *, temperature=0.5):
    """Pure-JAX reference mirroring the PyTorch code (for verification)."""
    def normalize(v):
        return v / jnp.maximum(jnp.linalg.norm(v, axis=-1, keepdims=True), 1e-12)

    x1n, x2n = normalize(x1), normalize(x2)
    lab1 = labels1.reshape(-1, 1)
    mask = (lab1 == lab1.T).astype(jnp.float32)
    if labels2 is not None:
        lab2 = labels2.reshape(-1, 1)
        mask = mask * (lab2 == lab2.T).astype(jnp.float32)
    mask = jnp.tile(mask, (2, 2))
    out = jnp.concatenate([x1n, x2n], axis=0)
    sim = out @ out.T
    pos = jnp.sum(sim * mask / temperature, axis=1)
    neg = jnp.sum(jnp.exp(sim / temperature) * (1.0 - mask), axis=-1)
    return jnp.mean((-pos + jnp.log(neg)) / jnp.sum(mask, axis=-1))


if __name__ == "__main__":
    temperature = 0.5
    key = jax.random.PRNGKey(0)
    k1, k2, k3, k4 = jax.random.split(key, 4)

    # small case (single-tile path)
    B, D = 8, 32
    x1 = jax.random.normal(k1, (B, D), dtype=jnp.float32)
    x2 = jax.random.normal(k2, (B, D), dtype=jnp.float32)
    labels1 = jax.random.randint(k3, (B,), 0, 4, dtype=jnp.int32)
    labels2 = jax.random.randint(k4, (B,), 0, 3, dtype=jnp.int32)

    loss = jax.block_until_ready(
        cl_forward(x1, x2, labels1, temperature=temperature))
    ref = cl_forward_ref(x1, x2, labels1, temperature=temperature)
    assert jnp.isfinite(loss), "loss is not finite"
    assert jnp.allclose(loss, ref, rtol=1e-2, atol=1e-2), (loss, ref)

    # two-label path
    loss2 = jax.block_until_ready(
        cl_forward(x1, x2, labels1, labels2, temperature=temperature))
    ref2 = cl_forward_ref(x1, x2, labels1, labels2, temperature=temperature)
    assert jnp.isfinite(loss2), "loss2 is not finite"
    assert jnp.allclose(loss2, ref2, rtol=1e-2, atol=1e-2), (loss2, ref2)

    # larger case: multi-block tiled path with column padding (sentinel labels)
    Bl, Dl = 300, 96
    k5, k6, k7 = jax.random.split(k1, 3)
    x1l = jax.random.normal(k5, (Bl, Dl), dtype=jnp.float32)
    x2l = jax.random.normal(k6, (Bl, Dl), dtype=jnp.float32)
    lab1l = jax.random.randint(k7, (Bl,), 0, 4, dtype=jnp.int32)
    loss3 = jax.block_until_ready(
        cl_forward(x1l, x2l, lab1l, temperature=temperature))
    ref3 = cl_forward_ref(x1l, x2l, lab1l, temperature=temperature)
    assert jnp.isfinite(loss3), "loss3 is not finite"
    assert jnp.allclose(loss3, ref3, rtol=1e-2, atol=1e-2), (loss3, ref3)

    print("KERNEL_OK")
</pallas_src>

<mosaic_0001>
module attributes {stable_mosaic.version = 11 : i64} {
  func.func @_cl_tiled_kernel(%arg0: i32, %arg1: i32, %arg2: memref<16x128xbf16, #tpu.memory_space<vmem>>, %arg3: memref<16x128xbf16, #tpu.memory_space<vmem>>, %arg4: memref<16x1xi32, #tpu.memory_space<vmem>>, %arg5: memref<1x16xi32, #tpu.memory_space<vmem>>, %arg6: memref<16x1xf32, #tpu.memory_space<vmem>>, %arg7: memref<16x1xf32, #tpu.memory_space<vmem>>, %arg8: memref<16x16xf32, #tpu.memory_space<vmem>>, %arg9: memref<16x16xf32, #tpu.memory_space<vmem>>) attributes {dimension_semantics = [#tpu.dimension_semantics<parallel>, #tpu.dimension_semantics<arbitrary>], iteration_bounds = array<i64: 1, 1>, scalar_prefetch = 0 : i64, scratch_operands = 2 : i64, tpu.core_type = #tpu.core_type<tc>, window_params = [{transform_indices = @transform_0, window_bounds = array<i64: 16, 128>}, {transform_indices = @transform_1, window_bounds = array<i64: 16, 128>}, {transform_indices = @transform_2, window_bounds = array<i64: 16, 1>}, {transform_indices = @transform_3, window_bounds = array<i64: 1, 16>}, {transform_indices = @transform_4, window_bounds = array<i64: 16, 1>}, {transform_indices = @transform_5, window_bounds = array<i64: 16, 1>}]} {
    %c0_i32 = arith.constant 0 : i32
    %0 = arith.cmpi eq, %arg1, %c0_i32 : i32
    %1 = arith.extui %0 : i1 to i32
    %c0_i32_0 = arith.constant 0 : i32
    %2 = arith.cmpi ne, %1, %c0_i32_0 : i32
    scf.if %2 {
      %cst_20 = arith.constant 0.000000e+00 : f32
      %25 = vector.broadcast %cst_20 : f32 to vector<16x16xf32>
      %c0_21 = arith.constant 0 : index
      %c0_22 = arith.constant 0 : index
      %26 = vector.load %arg8[%c0_21, %c0_22] : memref<16x16xf32, #tpu.memory_space<vmem>>, vector<16x16xf32>
      tpu.vector_store %arg8[%c0_21, %c0_22], %25 {strides = array<i32>} : memref<16x16xf32, #tpu.memory_space<vmem>>, vector<16x16xf32>,
      %cst_23 = arith.constant 0.000000e+00 : f32
      %27 = vector.broadcast %cst_23 : f32 to vector<16x16xf32>
      %c0_24 = arith.constant 0 : index
      %c0_25 = arith.constant 0 : index
      %28 = vector.load %arg9[%c0_24, %c0_25] : memref<16x16xf32, #tpu.memory_space<vmem>>, vector<16x16xf32>
      tpu.vector_store %arg9[%c0_24, %c0_25], %27 {strides = array<i32>} : memref<16x16xf32, #tpu.memory_space<vmem>>, vector<16x16xf32>,
    } else {
    }
    %c0 = arith.constant 0 : index
    %c0_1 = arith.constant 0 : index
    %3 = vector.load %arg2[%c0, %c0_1] : memref<16x128xbf16, #tpu.memory_space<vmem>>, vector<16x128xbf16>
    %c0_2 = arith.constant 0 : index
    %c0_3 = arith.constant 0 : index
    %4 = vector.load %arg3[%c0_2, %c0_3] : memref<16x128xbf16, #tpu.memory_space<vmem>>, vector<16x128xbf16>
    %cst = arith.constant dense<0.000000e+00> : vector<16x16xf32>
    %5 = tpu.matmul %3, %4, %cst {dimension_numbers = #tpu.dot_dimension_numbers<[1], [1], [0], [0], [0, 0, 1, 0], [], []>} : vector<16x128xbf16>, vector<16x128xbf16>, vector<16x16xf32> -> vector<16x16xf32>
    %6 = math.exp %5 : vector<16x16xf32>
    %c0_4 = arith.constant 0 : index
    %c0_5 = arith.constant 0 : index
    %7 = vector.load %arg4[%c0_4, %c0_5] : memref<16x1xi32, #tpu.memory_space<vmem>>, vector<16x1xi32>
    %c0_6 = arith.constant 0 : index
    %c0_7 = arith.constant 0 : index
    %8 = vector.load %arg5[%c0_6, %c0_7] : memref<1x16xi32, #tpu.memory_space<vmem>>, vector<1x16xi32>
    %9 = vector.broadcast %7 : vector<16x1xi32> to vector<16x16xi32>
    %10 = vector.broadcast %8 : vector<1x16xi32> to vector<16x16xi32>
    %11 = arith.cmpi eq, %9, %10 : vector<16x16xi32>
    %cst_8 = arith.constant 0.000000e+00 : f32
    %12 = vector.broadcast %cst_8 : f32 to vector<16x16xf32>
    %13 = arith.select %11, %5, %12 : vector<16x16xi1>, vector<16x16xf32>
    %cst_9 = arith.constant 0.000000e+00 : f32
    %14 = vector.broadcast %cst_9 : f32 to vector<16x16xf32>
    %15 = arith.select %11, %14, %6 : vector<16x16xi1>, vector<16x16xf32>
    %c0_10 = arith.constant 0 : index
    %c0_11 = arith.constant 0 : index
    %16 = vector.load %arg8[%c0_10, %c0_11] : memref<16x16xf32, #tpu.memory_space<vmem>>, vector<16x16xf32>
    %17 = arith.addf %16, %13 : vector<16x16xf32>
    %c0_12 = arith.constant 0 : index
    %c0_13 = arith.constant 0 : index
    %18 = vector.load %arg8[%c0_12, %c0_13] : memref<16x16xf32, #tpu.memory_space<vmem>>, vector<16x16xf32>
    tpu.vector_store %arg8[%c0_12, %c0_13], %17 {strides = array<i32>} : memref<16x16xf32, #tpu.memory_space<vmem>>, vector<16x16xf32>,
    %c0_14 = arith.constant 0 : index
    %c0_15 = arith.constant 0 : index
    %19 = vector.load %arg9[%c0_14, %c0_15] : memref<16x16xf32, #tpu.memory_space<vmem>>, vector<16x16xf32>
    %20 = arith.addf %19, %15 : vector<16x16xf32>
    %c0_16 = arith.constant 0 : index
    %c0_17 = arith.constant 0 : index
    %21 = vector.load %arg9[%c0_16, %c0_17] : memref<16x16xf32, #tpu.memory_space<vmem>>, vector<16x16xf32>
    tpu.vector_store %arg9[%c0_16, %c0_17], %20 {strides = array<i32>} : memref<16x16xf32, #tpu.memory_space<vmem>>, vector<16x16xf32>,
    %c0_i32_18 = arith.constant 0 : i32
    %22 = arith.cmpi eq, %arg1, %c0_i32_18 : i32
    %23 = arith.extui %22 : i1 to i32
    %c0_i32_19 = arith.constant 0 : i32
    %24 = arith.cmpi ne, %23, %c0_i32_19 : i32
    scf.if %24 {
      %c0_20 = arith.constant 0 : index
      %c0_21 = arith.constant 0 : index
      %25 = vector.load %arg8[%c0_20, %c0_21] : memref<16x16xf32, #tpu.memory_space<vmem>>, vector<16x16xf32>
      %cst_22 = arith.constant dense<0.000000e+00> : vector<16xf32>
      %26 = vector.multi_reduction <add>, %25, %cst_22 [1] : vector<16x16xf32> to vector<16xf32>
      %27 = vector.shape_cast %26 : vector<16xf32> to vector<16x1xf32>
      %c0_23 = arith.constant 0 : index
      %c0_24 = arith.constant 0 : index
      %28 = vector.load %arg9[%c0_23, %c0_24] : memref<16x16xf32, #tpu.memory_space<vmem>>, vector<16x16xf32>
      %cst_25 = arith.constant dense<0.000000e+00> : vector<16xf32>
      %29 = vector.multi_reduction <add>, %28, %cst_25 [1] : vector<16x16xf32> to vector<16xf32>
      %30 = vector.shape_cast %29 : vector<16xf32> to vector<16x1xf32>
      %cst_26 = arith.constant 0.000000e+00 : f32
      %31 = vector.broadcast %cst_26 : f32 to vector<16x1xf32>
      %32 = arith.subf %31, %27 : vector<16x1xf32>
      %33 = math.log %30 : vector<16x1xf32>
      %34 = arith.addf %32, %33 : vector<16x1xf32>
      %c0_27 = arith.constant 0 : index
      %c0_28 = arith.constant 0 : index
      %35 = vector.load %arg6[%c0_27, %c0_28] : memref<16x1xf32, #tpu.memory_space<vmem>>, vector<16x1xf32>
      %36 = arith.divf %34, %35 : vector<16x1xf32>
      %c0_29 = arith.constant 0 : index
      %c0_30 = arith.constant 0 : index
      %37 = vector.load %arg7[%c0_29, %c0_30] : memref<16x1xf32, #tpu.memory_space<vmem>>, vector<16x1xf32>
      tpu.vector_store %arg7[%c0_29, %c0_30], %36 {strides = array<i32>} : memref<16x1xf32, #tpu.memory_space<vmem>>, vector<16x1xf32>,
    } else {
    }
    return
  }
  func.func @transform_0(%arg0: i32, %arg1: i32) -> (i32, i32) {
    %c0_i32 = arith.constant 0 : i32
    %c0_i32_0 = arith.constant 0 : i32
    return %arg0, %c0_i32 : i32, i32
  }
  func.func @transform_1(%arg0: i32, %arg1: i32) -> (i32, i32) {
    %c0_i32 = arith.constant 0 : i32
    %c0_i32_0 = arith.constant 0 : i32
    return %arg1, %c0_i32 : i32, i32
  }
  func.func @transform_2(%arg0: i32, %arg1: i32) -> (i32, i32) {
    %c0_i32 = arith.constant 0 : i32
    %c0_i32_0 = arith.constant 0 : i32
    return %arg0, %c0_i32 : i32, i32
  }
  func.func @transform_3(%arg0: i32, %arg1: i32) -> (i32, i32) {
    %c0_i32 = arith.constant 0 : i32
    %c0_i32_0 = arith.constant 0 : i32
    return %c0_i32, %arg1 : i32, i32
  }
  func.func @transform_4(%arg0: i32, %arg1: i32) -> (i32, i32) {
    %c0_i32 = arith.constant 0 : i32
    %c0_i32_0 = arith.constant 0 : i32
    return %arg0, %c0_i32 : i32, i32
  }
  func.func @transform_5(%arg0: i32, %arg1: i32) -> (i32, i32) {
    %c0_i32 = arith.constant 0 : i32
    %c0_i32_0 = arith.constant 0 : i32
    return %arg0, %c0_i32 : i32, i32
  }
}

</mosaic_0001>

<bundles_post_ra>
// kernel: cl_forward.1
= control target key start
LH: loop header
LB: loop body
LE: loop exit
PB: predicated region body
PF: predicated region fallthrough
CT: control target
= control target key end

     0   :  { %vm25_vm0 = vcmask 130048   ;;  %v192_v0 = vmov 0.0   ;;  %vm193_vm1 = vmmov 0   ;;  %v194_v2 = vmov 0   ;;  %s268_s1 = inlined_call_operand.vmem [shape: bf16[16,128], index: 1, kind: input, shape index: {}, may-alias: {0,1}]   ;;  %s269_s2 = inlined_call_operand.vmem [shape: s32[16,1], index: 2, kind: input, shape index: {}]   ;;  %s270_s0 = inlined_call_operand.vmem [shape: bf16[16,128], index: 0, kind: input, shape index: {}, may-alias: {0,1}]   ;;  %s271_s3 = inlined_call_operand.vmem [shape: s32[1,16], index: 3, kind: input, shape index: {}]   ;;  %s272_s4 = inlined_call_operand.vmem [shape: f32[16,1], index: 4, kind: input, shape index: {}]   ;;  %s273_s5 = inlined_call_operand.vmem [shape: f32[16,1], index: 5, kind: output, shape index: {}]  }
   0x1   :  { %28 = vst.msk [vmem:[#allocation3] sm:$0xff] %vm25_vm0, %v192_v0  ;;  %29 = vst.msk [vmem:[#allocation3 + $0x8] sm:$0xff] %vm25_vm0, %v192_v0  ;;  %168 = vmatprep.subr.bf16.mxu0 %v192_v0  ;;  %v178_v1 = vld [vmem:[%s268_s1] sm:$0xff]   ;;  %170 = vmatprep.mubr.msk.bf16.mxu0 %vm193_vm1, %v192_v0  ;;  %v92_v4 = vld [vmem:[%s269_s2 + $0x8] sm:$0xff]  ;;  %vm156_vm4 = vcmask 7168  }
   0x2   :  { %26 = vst.msk [vmem:[#allocation2] sm:$0xff] %vm25_vm0, %v192_v0  ;;  %27 = vst.msk [vmem:[#allocation2 + $0x8] sm:$0xff] %vm25_vm0, %v192_v0  ;;  %177 = vset.pattern.permute.xlu0 %v194_v2  ;;  %169 = vmatpush3.bf16.xpose.msra.mxu0 %v178_v1  ;;  %v91_v3 = vld [vmem:[%s269_s2] sm:$0xff]  ;;  %v151_v40 = vld [vmem:[%s272_s4 + $0x8] sm:$0xff] }
   0x3   :  { %95 = vperm.xlu0 %177, %v91_v3   ;;  %v179_v5 = vld [vmem:[%s270_s0] sm:$0xff]  }
   0x4   :  { %v165_v7 = vld [vmem:[%s271_s3] ss:$0 sm:$0xff] }
   0x5   :  { %v150_v37 = vld [vmem:[%s272_s4] sm:$0xff] }
   0x7   :  { %98 = vperm.xlu0 %177, %v92_v4  }
   0x8   :  { %v117_v23 = vld [vmem:[#allocation3] sm:$0xff]  ;;  %v118_v27 = vld [vmem:[#allocation3 + $0x8] sm:$0xff] }
   0x9   :  { %171 = vmatmul.mubr.bf16.vlgmr.msra.gmra.mxu0 %v179_v5  ;;  %v110_v8 = vld [vmem:[#allocation2] sm:$0xff]  ;;  %v111_v15 = vld [vmem:[#allocation2 + $0x8] sm:$0xff] }
  0x7e   :  { %v96_v6 = vpop.permute.xlu0 %95 }
  0x7f   :  { %vm104_vm2 = vcmp.eq.s32.totalorder %v96_v6, %v165_v7 }
  0x82   :  { %v99_v9 = vpop.permute.xlu0 %98 }
  0x83   :  { %vm105_vm3 = vcmp.eq.s32.totalorder %v99_v9, %v165_v7 }
  0xc9   :  { %v80_v10 = vpop.f32.mrf.mxu0 }
  0xca   :  { %v87_v11 = vmul.f32 1.442695, %v80_v10  ;;  %v106_v12 = vsel %vm104_vm2, %v80_v10, 0.0 }
  0xcb   :  { %v112_v13 = vadd.f32 %v110_v8, %v106_v12  ;;  %v172_v14 = vpop.f32.mrf.mxu0 }
  0xcc   :  { %180 = vpow2.f32 %v87_v11 }
  0xcd   :  { %115 = vst.msk [vmem:[#allocation2] sm:$0xff] %vm25_vm0, %v112_v13  ;;  %v83_v16 = vpop.f32.mrf.mxu0 }
  0xce   :  { %v89_v17 = vmul.f32 1.442695, %v83_v16  ;;  %v107_v18 = vsel %vm105_vm3, %v83_v16, 0.0 }
  0xcf   :  { %v113_v19 = vadd.f32 %v111_v15, %v107_v18  ;;  %v173_v20 = vpop.f32.mrf.mxu0 }
  0xd0   :  { %182 = vpow2.f32 %v89_v17 }
  0xd1   :  { %116 = vst.msk [vmem:[#allocation2 + $0x8] sm:$0xff] %vm25_vm0, %v113_v19 }
  0xd4   :  { %v126_v21 = vld [vmem:[#allocation2] sm:$0xff] }
  0xd5   :  { %v128_v22 = vsel %vm25_vm0, %v126_v21, 0.0 }
  0xd6   :  { %129 = vadd.xlane.f32.xlu0 %v128_v22 }
  0xd8   :  { %v127_v35 = vld [vmem:[#allocation2 + $0x8] sm:$0xff] }
  0xd9   :  { %v181_v24 = vpop.eup %180  ;;  %v131_v36 = vsel %vm25_vm0, %v127_v35, 0.0 }
  0xda   :  { %v108_v25 = vsel %vm104_vm2, 0.0, %v181_v24 }
  0xdb   :  { %v119_v26 = vadd.f32 %v117_v23, %v108_v25 }
  0xdd   :  { %v183_v28 = vpop.eup %182  ;;  %121 = vst.msk [vmem:[#allocation3] sm:$0xff] %vm25_vm0, %v119_v26 }
  0xde   :  { %v109_v29 = vsel %vm105_vm3, 0.0, %v183_v28 }
  0xdf   :  { %v120_v30 = vadd.f32 %v118_v27, %v109_v29 }
  0xe1   :  { %122 = vst.msk [vmem:[#allocation3 + $0x8] sm:$0xff] %vm25_vm0, %v120_v30 }
  0xe4   :  { %v134_v31 = vld [vmem:[#allocation3] sm:$0xff] }
  0xe5   :  { %v136_v32 = vsel %vm25_vm0, %v134_v31, 0.0 }
  0xe6   :  { %137 = vadd.xlane.f32.xlu1 %v136_v32 }
  0xe8   :  { %v135_v33 = vld [vmem:[#allocation3 + $0x8] sm:$0xff] }
  0xe9   :  { %v139_v34 = vsel %vm25_vm0, %v135_v33, 0.0 }
  0xea   :  { %140 = vadd.xlane.f32.xlu1 %v139_v34 }
  0xee   :  { %132 = vadd.xlane.f32.xlu1 %v131_v36 }
 0x15f   :  { %v130_v41 = vpop.xlane.xlu0 %129 }
 0x160   :  { %v142_v43 = vsub.f32 0.0, %v130_v41 }
 0x16f   :  { %v138_v38 = vpop.xlane.xlu1 %137 }
 0x170   :  { %184 = vlog2.f32 %v138_v38 }
 0x171   :  { %186 = vrcp.f32 %v150_v37 }
 0x173   :  { %v141_v39 = vpop.xlane.xlu1 %140 }
 0x174   :  { %188 = vlog2.f32 %v141_v39 }
 0x175   :  { %190 = vrcp.f32 %v151_v40 }
 0x177   :  { %v133_v46 = vpop.xlane.xlu1 %132 }
 0x178   :  { %v143_v51 = vsub.f32 0.0, %v133_v46 }
 0x17d   :  { %v185_v42 = vpop.eup %184 }
 0x17e   :  { %v145_v44 = vmul.f32 0.6931472, %v185_v42  ;;  %v187_v45 = vpop.eup %186 }
 0x180   :  { %v148_v47 = vadd.f32 %v145_v44, %v142_v43 }
 0x181   :  { %v189_v48 = vpop.eup %188 }
 0x182   :  { %v153_v49 = vmul.f32 %v187_v45, %v148_v47  ;;  %v147_v50 = vmul.f32 0.6931472, %v189_v48  ;;  %v191_v52 = vpop.eup %190 }
 0x184   :  { %157 = vst.msk [vmem:[%s273_s5] sm:$0xff] %vm156_vm4, %v153_v49  ;;  %v149_v53 = vadd.f32 %v147_v50, %v143_v51 }
 0x186   :  { %v155_v54 = vmul.f32 %v191_v52, %v149_v53 }
 0x188   :  { %158 = vst.msk [vmem:[%s273_s5 + $0x8] sm:$0xff] %vm156_vm4, %v155_v54 }

</bundles_post_ra>
